<compile_context>
chip_gen: v7x
topology: tpu7x:2x2x1
jax: 0.10.0
libtpu: 0.0.40
codegen_flags: <defaults>
</compile_context>

<pallas_src>
import math

import jax
import jax.numpy as jnp
from jax.experimental import pallas as pl
from jax.experimental.pallas import tpu as pltpu


def _pick_num_chunks(total_bytes: int, seq_len: int) -> int:
    """Static chunk-count heuristic (per-generation sweet spots from review:
    1 DMA below ~1 MiB, 2-4 mid-size, up to 8 for very large tables)."""
    if total_bytes < (1 << 20):        # < 1 MiB: single DMA, overhead-bound
        n = 1
    elif total_bytes < (4 << 20):      # < 4 MiB
        n = 2
    elif total_bytes < (16 << 20):     # < 16 MiB
        n = 4
    else:
        n = 8
    return max(1, min(n, seq_len))


def learnable_positional_encoding_fwd(pos_embedding, x, *, use_pallas=True):
    """Pallas equivalent of LearnablePositionalEncoding.forward.

    pos_embedding: (1, max_len, D) parameter table
    x:             (B, seq_len, D) — only seq_len is used (matches PyTorch)
    returns:       (1, seq_len, D) == pos_embedding[:, :seq_len, :]
    """
    _, max_len, d = pos_embedding.shape
    seq_len = int(x.shape[1])  # static shapes assumed (standard jit)
    assert seq_len <= max_len, "seq_len exceeds max_len of positional table"

    dtype = pos_embedding.dtype
    itemsize = jnp.dtype(dtype).itemsize

    if seq_len == 0:
        return jnp.zeros((1, 0, d), dtype=dtype)

    if not use_pallas:
        # Fast path: let XLA fuse the slice into the consumer (best for small
        # tables, where the pallas_call custom-call boundary dominates).
        return pos_embedding[:, :seq_len, :]

    # Squeeze the degenerate leading batch dim (free view/reshape).
    table_2d = pos_embedding.reshape(max_len, d)

    total_bytes = seq_len * d * itemsize
    n_chunks = _pick_num_chunks(total_bytes, seq_len)

    # Static, contiguous row-chunk boundaries covering [0, seq_len).
    rows_per = -(-seq_len // n_chunks)  # ceil div
    chunks = []
    start = 0
    while start < seq_len:
        size = min(rows_per, seq_len - start)
        chunks.append((start, size))
        start += size
    n_chunks = len(chunks)

    def kernel(table_hbm, out_hbm, sems):
        # Issue all chunk DMAs (HBM -> HBM, fully contiguous: only the major
        # row dim is sliced), then wait on all — multiple outstanding DMAs
        # raise achieved HBM bandwidth on large tables.
        copies = []
        for i, (row0, nrows) in enumerate(chunks):
            cp = pltpu.make_async_copy(
                table_hbm.at[pl.ds(row0, nrows), :],
                out_hbm.at[pl.ds(row0, nrows), :],
                sems.at[i],
            )
            cp.start()
            copies.append(cp)
        for cp in copies:
            cp.wait()

    out_2d = pl.pallas_call(
        kernel,
        out_shape=jax.ShapeDtypeStruct((seq_len, d), dtype),
        # No grid: a single kernel invocation issuing n_chunks DMAs.
        in_specs=[pl.BlockSpec(memory_space=pl.ANY)],
        out_specs=pl.BlockSpec(memory_space=pl.ANY),
        scratch_shapes=[pltpu.SemaphoreType.DMA((n_chunks,))],
        cost_estimate=pl.CostEstimate(
            flops=0,
            transcendentals=0,
            bytes_accessed=2 * total_bytes,  # read + write
        ),
    )(table_2d)

    return out_2d.reshape(1, seq_len, d)


def init_pos_embedding(key, max_len, input_dim, dtype=jnp.float32):
    """xavier_uniform_ init matching nn.init.xavier_uniform_ on (1, max_len, D):
      fan_in  = size(1) * prod(size[2:]) = max_len * input_dim
      fan_out = size(0) * prod(size[2:]) = input_dim
    """
    fan_in = max_len * input_dim
    fan_out = 1 * input_dim
    bound = math.sqrt(6.0 / (fan_in + fan_out))
    return jax.random.uniform(
        key, (1, max_len, input_dim), dtype=dtype, minval=-bound, maxval=bound
    )


if __name__ == "__main__":
    key = jax.random.PRNGKey(0)
    k_pos, k_x, k_pos2, k_x2 = jax.random.split(key, 4)

    # Small case (single-DMA path), shapes consistent with the module.
    batch, seq_len, input_dim, max_len = 2, 8, 32, 64
    pos_embedding = init_pos_embedding(k_pos, max_len, input_dim)
    x = jax.random.normal(k_x, (batch, seq_len, input_dim), dtype=jnp.float32)

    out = learnable_positional_encoding_fwd(pos_embedding, x)
    out = jax.block_until_ready(out)

    ref = pos_embedding[:, :seq_len, :]
    assert out.shape == (1, seq_len, input_dim), out.shape
    assert out.dtype == pos_embedding.dtype
    assert bool(jnp.array_equal(out, ref)), "mismatch vs reference slice (small)"

    # Larger case to exercise the chunked multi-DMA path (~3 MiB copy -> 2 DMAs).
    batch2, seq_len2, input_dim2, max_len2 = 2, 1500, 512, 2048
    pos_embedding2 = init_pos_embedding(k_pos2, max_len2, input_dim2)
    x2 = jax.random.normal(k_x2, (batch2, seq_len2, input_dim2), dtype=jnp.float32)

    out2 = learnable_positional_encoding_fwd(pos_embedding2, x2)
    out2 = jax.block_until_ready(out2)

    ref2 = pos_embedding2[:, :seq_len2, :]
    assert out2.shape == (1, seq_len2, input_dim2), out2.shape
    assert bool(jnp.array_equal(out2, ref2)), "mismatch vs reference slice (chunked)"

    print("KERNEL_OK")
</pallas_src>

<mosaic_0001>
module attributes {stable_mosaic.version = 11 : i64} {
  func.func @kernel(%arg0: memref<64x32xf32, #tpu.memory_space<any>>, %arg1: memref<8x32xf32, #tpu.memory_space<any>>, %arg2: memref<1x!tpu.dma_semaphore, #tpu.memory_space<semaphore_mem>>) attributes {dimension_semantics = [], scalar_prefetch = 0 : i64, scratch_operands = 1 : i64, tpu.core_type = #tpu.core_type<tc>} {
    %c0_i32 = arith.constant 0 : i32
    %c0_i32_0 = arith.constant 0 : i32
    %c0_i32_1 = arith.constant 0 : i32
    %0 = tpu.memref_slice %arg0[%c0_i32_0, %c0_i32_1] : memref<64x32xf32, #tpu.memory_space<any>> -> memref<8x32xf32, #tpu.memory_space<any>>
    %c0_i32_2 = arith.constant 0 : i32
    %c0_i32_3 = arith.constant 0 : i32
    %1 = tpu.memref_slice %arg1[%c0_i32_2, %c0_i32_3] : memref<8x32xf32, #tpu.memory_space<any>> -> memref<8x32xf32, #tpu.memory_space<any>>
    %2 = tpu.memref_slice %arg2[%c0_i32] : memref<1x!tpu.dma_semaphore, #tpu.memory_space<semaphore_mem>> -> memref<1x!tpu.dma_semaphore, #tpu.memory_space<semaphore_mem>>
    %3 = tpu.memref_squeeze %2 : memref<1x!tpu.dma_semaphore, #tpu.memory_space<semaphore_mem>> -> memref<!tpu.dma_semaphore, #tpu.memory_space<semaphore_mem>>
    tpu.enqueue_dma source(%0 : memref<8x32xf32, #tpu.memory_space<any>>) target(%1 : memref<8x32xf32, #tpu.memory_space<any>>) target_semaphore(%3 : memref<!tpu.dma_semaphore, #tpu.memory_space<semaphore_mem>>)
    %c0_i32_4 = arith.constant 0 : i32
    %c0_i32_5 = arith.constant 0 : i32
    %c0_i32_6 = arith.constant 0 : i32
    %4 = tpu.memref_slice %arg0[%c0_i32_5, %c0_i32_6] : memref<64x32xf32, #tpu.memory_space<any>> -> memref<8x32xf32, #tpu.memory_space<any>>
    %c0_i32_7 = arith.constant 0 : i32
    %c0_i32_8 = arith.constant 0 : i32
    %5 = tpu.memref_slice %arg1[%c0_i32_7, %c0_i32_8] : memref<8x32xf32, #tpu.memory_space<any>> -> memref<8x32xf32, #tpu.memory_space<any>>
    %6 = tpu.memref_slice %arg2[%c0_i32_4] : memref<1x!tpu.dma_semaphore, #tpu.memory_space<semaphore_mem>> -> memref<1x!tpu.dma_semaphore, #tpu.memory_space<semaphore_mem>>
    %7 = tpu.memref_squeeze %6 : memref<1x!tpu.dma_semaphore, #tpu.memory_space<semaphore_mem>> -> memref<!tpu.dma_semaphore, #tpu.memory_space<semaphore_mem>>
    tpu.wait_dma2 semaphore(%7 : memref<!tpu.dma_semaphore, #tpu.memory_space<semaphore_mem>>) src(%4 : memref<8x32xf32, #tpu.memory_space<any>>) dst(%5 : memref<8x32xf32, #tpu.memory_space<any>>)
    return
  }
}

</mosaic_0001>

<bundles_post_ra>
// kernel: tpu_custom_call.1
= control target key start
LH: loop header
LB: loop body
LE: loop exit
PB: predicated region body
PF: predicated region fallthrough
CT: control target
= control target key end

     0   :  { %s76_s0 = inlined_call_operand.vmem [shape: f32[64,32], index: 0, kind: input, shape index: {}]   ;;  %s77_s1 = inlined_call_operand.hbm [shape: f32[8,32], index: 1, kind: output, shape index: {}]  }
   0x1   :  { %s13_s8 = sshll.u32 %s76_s0, 4  ;;  %s14_s8 = int_to_ptr.vmem [resolvable:$true] %s13_s8 }
   0x2   :  { %s27_s9 = scalar_lea.vmem %s14_s8, 128  ;;  %s31_s10 = scalar_lea.vmem %s14_s8, 1024 }
   0x3   :  { %p28_p0 = scmp.ne.s32.totalorder %s14_s8, %s27_s9  ;;  %p32_p1 = scmp.lt.s32.totalorder %s14_s8, %s14_s8 }
   0x4   :  { %p33_p2 = scmp.lt.s32.totalorder %s31_s10, %s27_s9 }
   0x6   :  { %p34_p3 = por %p33_p2, %p32_p1 }
   0x8   :  { %p35_p4 = pnand %p34_p3, %p28_p0 }
   0xa   :  { %38 = shalt.err (!%p35_p4)  }
   0xb   :  { %s39_s13 = scalar_lea.hbm %s77_s1, 128 }
   0xc   :  { %p40_p5 = scmp.ne.s32.totalorder %s77_s1, %s39_s13  ;;  %p43_p6 = scmp.lt.u32.totalorder %s39_s13, %s77_s1 }
   0xe   :  { %p45_p7 = pnand %p43_p6, %p40_p5 }
  0x10   :  { %48 = shalt.err (!%p45_p7)  }
  0x11   :  { %16 = dma.vmem_to_hbm [thread:$0]  %s14_s8, 128, %s77_s1, [#allocation2] }
  0x12   :  { %49 = dma.done.wait [#allocation2], 128 }
  0x13   :  { %50 = vsyncadd [#allocation2], 4294967168 }
  0x14   :  { %20 = vsyncmov [#allocation2] }
  0x17   :  { %s21_s19 = vpop.sfrf %20 }
  0x18   :  { %p26_p8 = scmp.ne.s32.totalorder %s21_s19, 0 }
  0x1a   :  { %25 = shalt.err (%p26_p8)  }

</bundles_post_ra>
